<compile_context>
chip_gen: v5e
topology: v5e:2x2
jax: 0.10.0
libtpu: 0.0.40
codegen_flags: <defaults>
</compile_context>

<pallas_src>
import functools

import jax
import jax.numpy as jnp
from jax import lax
from jax.experimental import pallas as pl
from jax.experimental.pallas import tpu as pltpu

_SOBEL_X = ((1.0, 2.0, 1.0), (0.0, 0.0, 0.0), (-1.0, -2.0, -1.0))
_SOBEL_Y = ((1.0, 0.0, -1.0), (2.0, 0.0, -2.0), (1.0, 0.0, -1.0))


def _content_loss_kernel(x_ref, t_ref, dh_ref, sh_ref, rs_ref, rd_ref,
                         part_ref, *, weight):
    """One image per grid step; writes 6 partial sums to part_ref (1,1,8)."""
    x = x_ref[...].astype(jnp.float32)            # (C, H, W)
    t = t_ref[...].astype(jnp.float32) * weight   # fused target*weight

    # Single pass over x / t for the target stats and the MSE(x, T) term.
    sum_t = jnp.sum(t)
    sum_t2 = jnp.sum(t * t)
    d = x - t
    sum_xt2 = jnp.sum(d * d)

    # The (C,C,3,3) sobel weights are channel-uniform, so the conv equals one
    # 3x3 stencil on the channel-sum, replicated across the C output channels.
    s = jnp.sum(x, axis=0)                        # (H, W)
    tc = jnp.sum(t, axis=0)                       # (H, W) channel-sum of T

    # Separable sobel as banded matmuls (band truncation == zero padding):
    #   Gx = dh @ s @ rs   ([1,0,-1] vertical,  [1,2,1] horizontal)
    #   Gy = sh @ s @ rd   ([1,2,1]  vertical,  [1,0,-1] horizontal)
    gx = jnp.dot(jnp.dot(dh_ref[...], s, preferred_element_type=jnp.float32),
                 rs_ref[...], preferred_element_type=jnp.float32)
    gy = jnp.dot(jnp.dot(sh_ref[...], s, preferred_element_type=jnp.float32),
                 rd_ref[...], preferred_element_type=jnp.float32)
    g2 = gx * gx + gy * gy
    g = jnp.sqrt(g2)

    sum_g = jnp.sum(g)            # one channel's worth; replication handled later
    sum_g2 = jnp.sum(g2)
    sum_gt = jnp.sum(g * tc)      # cross term for the expanded MSE(Gn, -tn)

    lane = lax.broadcasted_iota(jnp.int32, part_ref.shape, 2)
    part_ref[...] = jnp.where(lane == 0, sum_t,
                    jnp.where(lane == 1, sum_t2,
                    jnp.where(lane == 2, sum_xt2,
                    jnp.where(lane == 3, sum_g,
                    jnp.where(lane == 4, sum_g2,
                    jnp.where(lane == 5, sum_gt, 0.0))))))


def _band(n, cm1, c0, cp1):
    """Banded (n,n) matrix: M[r, r-1]=cm1, M[r, r]=c0, M[r, r+1]=cp1."""
    r = jnp.arange(n)[:, None]
    c = jnp.arange(n)[None, :]
    m = jnp.where(c == r - 1, cm1, 0.0)
    m = m + jnp.where(c == r, c0, 0.0)
    m = m + jnp.where(c == r + 1, cp1, 0.0)
    return m.astype(jnp.float32)


def content_loss_forward(x, target, weight):
    """Returns (output, loss). output is x itself (identity, no HBM copy)."""
    n, c, h, w = x.shape
    wgt = float(weight)

    # Banded operators realizing the separable 3-tap sobel with zero padding.
    dh = _band(h, 1.0, 0.0, -1.0)   # left-multiply:  u[i] = s[i-1] - s[i+1]
    sh = _band(h, 1.0, 2.0, 1.0)    # left-multiply:  u[i] = s[i-1] + 2 s[i] + s[i+1]
    rs = _band(w, 1.0, 2.0, 1.0)    # right-multiply: v[j] = s[j-1] + 2 s[j] + s[j+1]
    rd = _band(w, -1.0, 0.0, 1.0)   # right-multiply: v[j] = s[j-1] - s[j+1]

    kernel = functools.partial(_content_loss_kernel, weight=wgt)
    partials = pl.pallas_call(
        kernel,
        out_shape=jax.ShapeDtypeStruct((n, 1, 8), jnp.float32),
        grid=(n,),
        in_specs=[
            pl.BlockSpec((None, c, h, w), lambda i: (i, 0, 0, 0)),
            pl.BlockSpec((None, c, h, w), lambda i: (i, 0, 0, 0)),
            pl.BlockSpec((h, h), lambda i: (0, 0)),
            pl.BlockSpec((h, h), lambda i: (0, 0)),
            pl.BlockSpec((w, w), lambda i: (0, 0)),
            pl.BlockSpec((w, w), lambda i: (0, 0)),
        ],
        out_specs=pl.BlockSpec((1, 1, 8), lambda i: (i, 0, 0)),
        compiler_params=pltpu.CompilerParams(
            dimension_semantics=("parallel",)),
    )(x, target, dh, sh, rs, rd)

    # Final combination: a handful of scalar flops in plain JAX.
    p = jnp.sum(partials.reshape(n, 8), axis=0)
    sum_t, sum_t2, sum_xt2 = p[0], p[1], p[2]
    sum_g, sum_g2, sum_gt = p[3], p[4], p[5]

    m = float(n * c * h * w)
    eps = 1e-5

    # G is replicated across C output channels -> its sums scale by C.
    total_g = c * sum_g
    total_g2 = c * sum_g2
    # TODO(synk): sum / sum-of-squares variance; switch to a shifted (Welford)
    # form if inputs can have |mean| >> std (catastrophic cancellation).
    ssd_g = jnp.maximum(total_g2 - total_g * total_g / m, 0.0)
    ssd_t = jnp.maximum(sum_t2 - sum_t * sum_t / m, 0.0)
    g_std = jnp.sqrt(ssd_g / (m - 1.0))       # torch unbiased std
    t_std = jnp.sqrt(ssd_t / (m - 1.0))

    a = 1.0 / (g_std + eps)
    b = 1.0 / (t_std + eps)

    # sum over NCHW of (Gn + tn)^2, expanded so no NCHW temporary is built:
    #   = a^2*ssd_g + 2ab*(sum(G*T) - m*mean(G)*mean(T)) + b^2*ssd_t
    cross = sum_gt - total_g * sum_t / m
    sum_sq = a * a * ssd_g + 2.0 * a * b * cross + b * b * ssd_t

    mse1 = (wgt * wgt) * sum_sq / m           # MSE(Gn*w, -tn*w)
    mse2 = sum_xt2 / m                        # MSE(x, target*w)
    loss = 10.0 * mse1 + 2.0 * mse2
    return x, loss


def _reference_loss(x, target_scaled, weight):
    """Pure-JAX reference mirroring the PyTorch forward exactly."""
    c = x.shape[1]
    kx = jnp.array(_SOBEL_X, jnp.float32)
    ky = jnp.array(_SOBEL_Y, jnp.float32)
    wx = jnp.broadcast_to(kx, (c, c, 3, 3))
    wy = jnp.broadcast_to(ky, (c, c, 3, 3))
    dn = lax.conv_dimension_numbers(x.shape, wx.shape, ("NCHW", "OIHW", "NCHW"))
    gx = lax.conv_general_dilated(x, wx, (1, 1), ((1, 1), (1, 1)),
                                  dimension_numbers=dn,
                                  precision=lax.Precision.HIGHEST)
    gy = lax.conv_general_dilated(x, wy, (1, 1), ((1, 1), (1, 1)),
                                  dimension_numbers=dn,
                                  precision=lax.Precision.HIGHEST)
    g = jnp.sqrt(gx * gx + gy * gy)

    def std_unbiased(a):
        return jnp.sqrt(jnp.sum((a - a.mean()) ** 2) / (a.size - 1))

    gn = (g - g.mean()) / (std_unbiased(g) + 1e-5)
    tn = (target_scaled - target_scaled.mean()) / (std_unbiased(target_scaled) + 1e-5)
    loss = 10.0 * jnp.mean((gn * weight - (-tn * weight)) ** 2)
    loss = loss + 2.0 * jnp.mean((x - target_scaled) ** 2)
    return loss


if __name__ == "__main__":
    key = jax.random.PRNGKey(0)
    kx_key, kt_key = jax.random.split(key)
    x = jax.random.normal(kx_key, (2, 4, 16, 16), jnp.float32)
    target = jax.random.normal(kt_key, (2, 4, 16, 16), jnp.float32)
    weight = 0.7

    out, loss = content_loss_forward(x, target, weight)
    jax.block_until_ready((out, loss))

    ref_loss = _reference_loss(x, target * weight, weight)
    assert out is x, "forward output must be the identity pass-through (no copy)"
    # Tightened vs. the previous 1e-2; kept above f32-exact level to leave
    # headroom for MXU f32 multi-pass rounding in the stencil matmuls.
    assert bool(jnp.allclose(loss, ref_loss, rtol=5e-3, atol=5e-3)), (
        float(loss), float(ref_loss))

    print("KERNEL_OK")
</pallas_src>

<mosaic_0001>
module attributes {stable_mosaic.version = 11 : i64} {
  func.func @_content_loss_kernel(%arg0: i32, %arg1: memref<1x4x16x16xf32, #tpu.memory_space<vmem>>, %arg2: memref<1x4x16x16xf32, #tpu.memory_space<vmem>>, %arg3: memref<16x16xf32, #tpu.memory_space<vmem>>, %arg4: memref<16x16xf32, #tpu.memory_space<vmem>>, %arg5: memref<16x16xf32, #tpu.memory_space<vmem>>, %arg6: memref<16x16xf32, #tpu.memory_space<vmem>>, %arg7: memref<1x1x8xf32, #tpu.memory_space<vmem>>) attributes {dimension_semantics = [#tpu.dimension_semantics<parallel>], iteration_bounds = array<i64: 2>, scalar_prefetch = 0 : i64, scratch_operands = 0 : i64, tpu.core_type = #tpu.core_type<tc>, window_params = [{transform_indices = @transform_0, window_bounds = array<i64: 1, 4, 16, 16>}, {transform_indices = @transform_1, window_bounds = array<i64: 1, 4, 16, 16>}, {pipeline_mode = #tpu.pipeline_mode<synchronous>, transform_indices = @transform_2, window_bounds = array<i64: 16, 16>}, {pipeline_mode = #tpu.pipeline_mode<synchronous>, transform_indices = @transform_3, window_bounds = array<i64: 16, 16>}, {pipeline_mode = #tpu.pipeline_mode<synchronous>, transform_indices = @transform_4, window_bounds = array<i64: 16, 16>}, {pipeline_mode = #tpu.pipeline_mode<synchronous>, transform_indices = @transform_5, window_bounds = array<i64: 16, 16>}, {transform_indices = @transform_6, window_bounds = array<i64: 1, 1, 8>}]} {
    %c0 = arith.constant 0 : index
    %c0_0 = arith.constant 0 : index
    %c0_1 = arith.constant 0 : index
    %c0_2 = arith.constant 0 : index
    %0 = vector.load %arg1[%c0, %c0_0, %c0_1, %c0_2] : memref<1x4x16x16xf32, #tpu.memory_space<vmem>>, vector<1x4x16x16xf32>
    %1 = vector.shape_cast %0 : vector<1x4x16x16xf32> to vector<4x16x16xf32>
    %c0_3 = arith.constant 0 : index
    %c0_4 = arith.constant 0 : index
    %c0_5 = arith.constant 0 : index
    %c0_6 = arith.constant 0 : index
    %2 = vector.load %arg2[%c0_3, %c0_4, %c0_5, %c0_6] : memref<1x4x16x16xf32, #tpu.memory_space<vmem>>, vector<1x4x16x16xf32>
    %3 = vector.shape_cast %2 : vector<1x4x16x16xf32> to vector<4x16x16xf32>
    %cst = arith.constant 0.699999988 : f32
    %4 = vector.broadcast %cst : f32 to vector<4x16x16xf32>
    %5 = arith.mulf %3, %4 : vector<4x16x16xf32>
    %6 = vector.shape_cast %5 : vector<4x16x16xf32> to vector<1x4x16x16xf32>
    %cst_7 = arith.constant dense<0.000000e+00> : vector<1xf32>
    %7 = vector.multi_reduction <add>, %6, %cst_7 [1, 2, 3] : vector<1x4x16x16xf32> to vector<1xf32>
    %8 = vector.shape_cast %7 : vector<1xf32> to vector<1x1x1x1xf32>
    %9 = vector.extract %8[0, 0, 0, 0] : f32 from vector<1x1x1x1xf32>
    %10 = arith.mulf %5, %5 : vector<4x16x16xf32>
    %11 = vector.shape_cast %10 : vector<4x16x16xf32> to vector<1x4x16x16xf32>
    %cst_8 = arith.constant dense<0.000000e+00> : vector<1xf32>
    %12 = vector.multi_reduction <add>, %11, %cst_8 [1, 2, 3] : vector<1x4x16x16xf32> to vector<1xf32>
    %13 = vector.shape_cast %12 : vector<1xf32> to vector<1x1x1x1xf32>
    %14 = vector.extract %13[0, 0, 0, 0] : f32 from vector<1x1x1x1xf32>
    %15 = arith.subf %1, %5 : vector<4x16x16xf32>
    %16 = arith.mulf %15, %15 : vector<4x16x16xf32>
    %17 = vector.shape_cast %16 : vector<4x16x16xf32> to vector<1x4x16x16xf32>
    %cst_9 = arith.constant dense<0.000000e+00> : vector<1xf32>
    %18 = vector.multi_reduction <add>, %17, %cst_9 [1, 2, 3] : vector<1x4x16x16xf32> to vector<1xf32>
    %19 = vector.shape_cast %18 : vector<1xf32> to vector<1x1x1x1xf32>
    %20 = vector.extract %19[0, 0, 0, 0] : f32 from vector<1x1x1x1xf32>
    %cst_10 = arith.constant dense<0.000000e+00> : vector<16x16xf32>
    %21 = vector.multi_reduction <add>, %1, %cst_10 [0] : vector<4x16x16xf32> to vector<16x16xf32>
    %cst_11 = arith.constant dense<0.000000e+00> : vector<16x16xf32>
    %22 = vector.multi_reduction <add>, %5, %cst_11 [0] : vector<4x16x16xf32> to vector<16x16xf32>
    %c0_12 = arith.constant 0 : index
    %c0_13 = arith.constant 0 : index
    %23 = vector.load %arg3[%c0_12, %c0_13] : memref<16x16xf32, #tpu.memory_space<vmem>>, vector<16x16xf32>
    %cst_14 = arith.constant dense<0.000000e+00> : vector<16x16xf32>
    %24 = tpu.matmul %23, %21, %cst_14 {dimension_numbers = #tpu.dot_dimension_numbers<[1], [0], [0], [1], [0, 0, 1, 1], [], []>} : vector<16x16xf32>, vector<16x16xf32>, vector<16x16xf32> -> vector<16x16xf32>
    %c0_15 = arith.constant 0 : index
    %c0_16 = arith.constant 0 : index
    %25 = vector.load %arg5[%c0_15, %c0_16] : memref<16x16xf32, #tpu.memory_space<vmem>>, vector<16x16xf32>
    %cst_17 = arith.constant dense<0.000000e+00> : vector<16x16xf32>
    %26 = tpu.matmul %24, %25, %cst_17 {dimension_numbers = #tpu.dot_dimension_numbers<[1], [0], [0], [1], [0, 0, 1, 1], [], []>} : vector<16x16xf32>, vector<16x16xf32>, vector<16x16xf32> -> vector<16x16xf32>
    %c0_18 = arith.constant 0 : index
    %c0_19 = arith.constant 0 : index
    %27 = vector.load %arg4[%c0_18, %c0_19] : memref<16x16xf32, #tpu.memory_space<vmem>>, vector<16x16xf32>
    %cst_20 = arith.constant dense<0.000000e+00> : vector<16x16xf32>
    %28 = tpu.matmul %27, %21, %cst_20 {dimension_numbers = #tpu.dot_dimension_numbers<[1], [0], [0], [1], [0, 0, 1, 1], [], []>} : vector<16x16xf32>, vector<16x16xf32>, vector<16x16xf32> -> vector<16x16xf32>
    %c0_21 = arith.constant 0 : index
    %c0_22 = arith.constant 0 : index
    %29 = vector.load %arg6[%c0_21, %c0_22] : memref<16x16xf32, #tpu.memory_space<vmem>>, vector<16x16xf32>
    %cst_23 = arith.constant dense<0.000000e+00> : vector<16x16xf32>
    %30 = tpu.matmul %28, %29, %cst_23 {dimension_numbers = #tpu.dot_dimension_numbers<[1], [0], [0], [1], [0, 0, 1, 1], [], []>} : vector<16x16xf32>, vector<16x16xf32>, vector<16x16xf32> -> vector<16x16xf32>
    %31 = arith.mulf %26, %26 : vector<16x16xf32>
    %32 = arith.mulf %30, %30 : vector<16x16xf32>
    %33 = arith.addf %31, %32 : vector<16x16xf32>
    %34 = math.sqrt %33 : vector<16x16xf32>
    %35 = vector.shape_cast %34 : vector<16x16xf32> to vector<1x16x16xf32>
    %cst_24 = arith.constant dense<0.000000e+00> : vector<1xf32>
    %36 = vector.multi_reduction <add>, %35, %cst_24 [1, 2] : vector<1x16x16xf32> to vector<1xf32>
    %37 = vector.shape_cast %36 : vector<1xf32> to vector<1x1x1xf32>
    %38 = vector.extract %37[0, 0, 0] : f32 from vector<1x1x1xf32>
    %39 = vector.shape_cast %33 : vector<16x16xf32> to vector<1x16x16xf32>
    %cst_25 = arith.constant dense<0.000000e+00> : vector<1xf32>
    %40 = vector.multi_reduction <add>, %39, %cst_25 [1, 2] : vector<1x16x16xf32> to vector<1xf32>
    %41 = vector.shape_cast %40 : vector<1xf32> to vector<1x1x1xf32>
    %42 = vector.extract %41[0, 0, 0] : f32 from vector<1x1x1xf32>
    %43 = arith.mulf %34, %22 : vector<16x16xf32>
    %44 = vector.shape_cast %43 : vector<16x16xf32> to vector<1x16x16xf32>
    %cst_26 = arith.constant dense<0.000000e+00> : vector<1xf32>
    %45 = vector.multi_reduction <add>, %44, %cst_26 [1, 2] : vector<1x16x16xf32> to vector<1xf32>
    %46 = vector.shape_cast %45 : vector<1xf32> to vector<1x1x1xf32>
    %47 = vector.extract %46[0, 0, 0] : f32 from vector<1x1x1xf32>
    %48 = tpu.iota {dimensions = array<i32: 2>} : vector<1x1x8xi32>
    %c0_i32 = arith.constant 0 : i32
    %49 = vector.broadcast %c0_i32 : i32 to vector<1x1x8xi32>
    %50 = arith.cmpi eq, %48, %49 : vector<1x1x8xi32>
    %c1_i32 = arith.constant 1 : i32
    %51 = vector.broadcast %c1_i32 : i32 to vector<1x1x8xi32>
    %52 = arith.cmpi eq, %48, %51 : vector<1x1x8xi32>
    %c2_i32 = arith.constant 2 : i32
    %53 = vector.broadcast %c2_i32 : i32 to vector<1x1x8xi32>
    %54 = arith.cmpi eq, %48, %53 : vector<1x1x8xi32>
    %c3_i32 = arith.constant 3 : i32
    %55 = vector.broadcast %c3_i32 : i32 to vector<1x1x8xi32>
    %56 = arith.cmpi eq, %48, %55 : vector<1x1x8xi32>
    %c4_i32 = arith.constant 4 : i32
    %57 = vector.broadcast %c4_i32 : i32 to vector<1x1x8xi32>
    %58 = arith.cmpi eq, %48, %57 : vector<1x1x8xi32>
    %c5_i32 = arith.constant 5 : i32
    %59 = vector.broadcast %c5_i32 : i32 to vector<1x1x8xi32>
    %60 = arith.cmpi eq, %48, %59 : vector<1x1x8xi32>
    %cst_27 = arith.constant 0.000000e+00 : f32
    %61 = vector.broadcast %47 : f32 to vector<1x1x8xf32>
    %62 = vector.broadcast %cst_27 : f32 to vector<1x1x8xf32>
    %63 = arith.select %60, %61, %62 : vector<1x1x8xi1>, vector<1x1x8xf32>
    %64 = vector.broadcast %42 : f32 to vector<1x1x8xf32>
    %65 = arith.select %58, %64, %63 : vector<1x1x8xi1>, vector<1x1x8xf32>
    %66 = vector.broadcast %38 : f32 to vector<1x1x8xf32>
    %67 = arith.select %56, %66, %65 : vector<1x1x8xi1>, vector<1x1x8xf32>
    %68 = vector.broadcast %20 : f32 to vector<1x1x8xf32>
    %69 = arith.select %54, %68, %67 : vector<1x1x8xi1>, vector<1x1x8xf32>
    %70 = vector.broadcast %14 : f32 to vector<1x1x8xf32>
    %71 = arith.select %52, %70, %69 : vector<1x1x8xi1>, vector<1x1x8xf32>
    %72 = vector.broadcast %9 : f32 to vector<1x1x8xf32>
    %73 = arith.select %50, %72, %71 : vector<1x1x8xi1>, vector<1x1x8xf32>
    %c0_28 = arith.constant 0 : index
    %c0_29 = arith.constant 0 : index
    %c0_30 = arith.constant 0 : index
    %74 = vector.load %arg7[%c0_28, %c0_29, %c0_30] : memref<1x1x8xf32, #tpu.memory_space<vmem>>, vector<1x1x8xf32>
    tpu.vector_store %arg7[%c0_28, %c0_29, %c0_30], %73 {strides = array<i32>} : memref<1x1x8xf32, #tpu.memory_space<vmem>>, vector<1x1x8xf32>,
    return
  }
  func.func @transform_0(%arg0: i32) -> (i32, i32, i32, i32) {
    %c0_i32 = arith.constant 0 : i32
    %c0_i32_0 = arith.constant 0 : i32
    %c0_i32_1 = arith.constant 0 : i32
    %c0_i32_2 = arith.constant 0 : i32
    return %arg0, %c0_i32, %c0_i32_0, %c0_i32_1 : i32, i32, i32, i32
  }
  func.func @transform_1(%arg0: i32) -> (i32, i32, i32, i32) {
    %c0_i32 = arith.constant 0 : i32
    %c0_i32_0 = arith.constant 0 : i32
    %c0_i32_1 = arith.constant 0 : i32
    %c0_i32_2 = arith.constant 0 : i32
    return %arg0, %c0_i32, %c0_i32_0, %c0_i32_1 : i32, i32, i32, i32
  }
  func.func @transform_2(%arg0: i32) -> (i32, i32) {
    %c0_i32 = arith.constant 0 : i32
    %c0_i32_0 = arith.constant 0 : i32
    %c0_i32_1 = arith.constant 0 : i32
    return %c0_i32, %c0_i32_0 : i32, i32
  }
  func.func @transform_3(%arg0: i32) -> (i32, i32) {
    %c0_i32 = arith.constant 0 : i32
    %c0_i32_0 = arith.constant 0 : i32
    %c0_i32_1 = arith.constant 0 : i32
    return %c0_i32, %c0_i32_0 : i32, i32
  }
  func.func @transform_4(%arg0: i32) -> (i32, i32) {
    %c0_i32 = arith.constant 0 : i32
    %c0_i32_0 = arith.constant 0 : i32
    %c0_i32_1 = arith.constant 0 : i32
    return %c0_i32, %c0_i32_0 : i32, i32
  }
  func.func @transform_5(%arg0: i32) -> (i32, i32) {
    %c0_i32 = arith.constant 0 : i32
    %c0_i32_0 = arith.constant 0 : i32
    %c0_i32_1 = arith.constant 0 : i32
    return %c0_i32, %c0_i32_0 : i32, i32
  }
  func.func @transform_6(%arg0: i32) -> (i32, i32, i32) {
    %c0_i32 = arith.constant 0 : i32
    %c0_i32_0 = arith.constant 0 : i32
    %c0_i32_1 = arith.constant 0 : i32
    return %arg0, %c0_i32, %c0_i32_0 : i32, i32, i32
  }
}

</mosaic_0001>

<bundles_post_ra>
// kernel: tpu_custom_call.1
= control target key start
LH: loop header
LB: loop body
LE: loop exit
PB: predicated region body
PF: predicated region fallthrough
CT: control target
= control target key end

     0   :  { %s1648_s0 = inlined_call_operand.hbm [shape: f32[2,4,16,16], index: 0, kind: input, shape index: {}]   ;;  %s1649_s1 = inlined_call_operand.hbm [shape: f32[2,4,16,16], index: 1, kind: input, shape index: {}]   ;;  %s1650_s2 = inlined_call_operand.hbm [shape: f32[16,16], index: 2, kind: input, shape index: {}]   ;;  %s1651_s3 = inlined_call_operand.hbm [shape: f32[16,16], index: 3, kind: input, shape index: {}]   ;;  %s1652_s4 = inlined_call_operand.hbm [shape: f32[16,16], index: 4, kind: input, shape index: {}]   ;;  %s1653_s5 = inlined_call_operand.hbm [shape: f32[16,16], index: 5, kind: input, shape index: {}]   ;;  %s1654_s6 = inlined_call_operand.hbm [shape: f32[2,1,8], index: 6, kind: output, shape index: {}]  }
   0x1   :  { %1659 = sst [smem:[#allocation20_spill]] %s1648_s0 }
   0x2   :  { %1660 = sst [smem:[#allocation21_spill]] %s1650_s2 }
   0x3   :  { %1661 = sst [smem:[#allocation22_spill]] %s1651_s3 }
   0x4   :  { %1662 = sst [smem:[#allocation23_spill]] %s1652_s4 }
   0x5   :  { %1663 = sst [smem:[#allocation24_spill]] %s1653_s5 }
   0x6   :  { %11 = vsyncpa [#allocation3], 0 }
   0x7   :  { %13 = vsyncpa [#allocation3 + $0x1], 0 }
   0x8   :  { %14 = vsyncpa [#allocation6], 0 }
   0x9   :  { %16 = vsyncpa [#allocation6 + $0x1], 0 }
   0xa   :  { %17 = vsyncpa [#allocation9], 0 }
   0xb   :  { %18 = vsyncpa [#allocation12], 0 }
   0xc   :  { %19 = vsyncpa [#allocation4], 0 }
   0xd   :  { %21 = vsyncpa [#allocation4 + $0x1], 0  ;;  %s1321_s21 = smov 0   ;;  %s1323_s22 = smov 0  }
   0xe   :  { %s1325_s23 = smov 0   ;;  %s1327_s24 = smov 0  }
   0xf LB: > { %s1342_s25 = sadd.s32 4294967295, %s1278_s24   ;;  %s874_s26 = sadd.s32 4294967294, %s1278_s24   ;;  %s1278_s24 = sphi %s1327_s24, %s1681_s24   ;;  %s1274_s23 = sphi %s1325_s23, %s1680_s23   ;;  %s1270_s22 = sphi %s1323_s22, %s1679_s22   ;;  %s1266_s21 = sphi %s1321_s21, %s1678_s21  }
  0x10   : > { %p47_p0 = scmp.ne.s32.totalorder %s1270_s22, %s1266_s21  ;;  %p48_p1 = scmp.eq.s32.totalorder %s1342_s25, 0 }
  0x11   : > { %p181_p2 = scmp.eq.s32.totalorder %s1342_s25, 1  ;;  %p187_p3 = scmp.eq.s32.totalorder %s874_s26, 1 }
  0x12   : > { %p1351_p4 = por %p48_p1, %p47_p0  ;;  %p875_p5 = scmp.ge.s32.totalorder %s1278_s24, 1 }
  0x13   : > { %p1356_p6 = por %p187_p3, %p47_p0  ;;  %p194_p7 = scmp.lt.s32.totalorder %s1278_s24, 3 }
  0x14   : > { %s1666_s2 = sld [smem:[#allocation21_spill]]  ;;  %s1280_s9 = smov [#allocation7]  }
  0x15   : > { %p1364_p8 = pnand %p875_p5, %p194_p7  ;;  %s207_s10 = sshll.u32 %s1280_s9, 4  ;;  %s208_s10 = int_to_ptr.vmem [resolvable:$true] %s207_s10 }
  0x16   : > { %s1669_s3 = sld [smem:[#allocation22_spill]]  ;;  %s1655_s15 = smov 128  }
  0x17   : > { %p940_p9 = pneg %p1364_p8  ;;  %s1657_s16 = smov 8  }
  0x18   : > { %s1283_s17 = smov [#allocation8]   ;;  %s1670_s4 = sld [smem:[#allocation23_spill]] }
  0x19   : > { %p1372_p10 = pnand %p940_p9, %p48_p1  ;;  %s221_s18 = sshll.u32 %s1283_s17, 4  ;;  %s222_s18 = int_to_ptr.vmem [resolvable:$true] %s221_s18 }
  0x1a   : > { %s205_s7 = sshll.u32 %s1666_s2, 4  ;;  %s1671_s5 = sld [smem:[#allocation24_spill]]  ;;  %s206_s7 = int_to_ptr.hbm [resolvable:$true] %s205_s7 }
  0x1b   : > { %943 = dma.hbm_to_vmem [thread:$0]  (!%p1372_p10), %s206_s7, 256, %s208_s10, [#allocation6], %s1655_s15, %s1655_s15, %s1657_s16  }
  0x1c   : > { %s219_s14 = sshll.u32 %s1669_s3, 4  ;;  %s1284_s9 = smov [#allocation10]   ;;  %s220_s14 = int_to_ptr.hbm [resolvable:$true] %s219_s14 }
  0x1d   : > { %946 = dma.hbm_to_vmem [thread:$0]  (!%p1372_p10), %s220_s14, 256, %s222_s18, [#allocation9], %s1655_s15, %s1655_s15, %s1657_s16  }
  0x1e   : > { %s233_s26 = sshll.u32 %s1670_s4, 4  ;;  %s235_s10 = sshll.u32 %s1284_s9, 4  ;;  %s234_s26 = int_to_ptr.hbm [resolvable:$true] %s233_s26  ;;  %s236_s10 = int_to_ptr.vmem [resolvable:$true] %s235_s10 }
  0x1f   : > { %949 = dma.hbm_to_vmem [thread:$0]  (!%p1372_p10), %s234_s26, 256, %s236_s10, [#allocation9], %s1655_s15, %s1655_s15, %s1657_s16  }
  0x20   : > { %s247_s7 = sshll.u32 %s1671_s5, 4  ;;  %s1285_s12 = smov [#allocation11]   ;;  %s248_s7 = int_to_ptr.hbm [resolvable:$true] %s247_s7 }
  0x21   : > { %s249_s13 = sshll.u32 %s1285_s12, 4  ;;  %s1407_s14 = sadd.s32 1, %s1278_s24   ;;  %s250_s13 = int_to_ptr.vmem [resolvable:$true] %s249_s13 }
  0x22   : > { %952 = dma.hbm_to_vmem [thread:$0]  (!%p1372_p10), %s248_s7, 256, %s250_s13, [#allocation12], %s1655_s15, %s1655_s15, %s1657_s16  }
  0x23   : > { %s34_s17 = sadd.s32 1, %s1274_s23  ;;  %s31_s18 = ssub.s32 %s1278_s24, %s1407_s14 }
  0x24   : > { %p41_p12 = scmp.ne.s32.totalorder %s1274_s23, %s1270_s22  ;;  %p32_p13 = scmp.eq.s32.totalorder %s31_s18, 0 }
  0x25   : > { %p42_p0 = scmp.eq.s32.totalorder %s1278_s24, 0  ;;  %p968_p5 = scmp.lt.s32.totalorder %s1278_s24, 2 }
  0x26   : > { %p1417_p3 = por %p181_p2, %p41_p12  ;;  %s263_s11 = sand.u32 1, %s1274_s23  }
  0x27   : > { %s1423_s20 = scalar_select %p32_p13, %s1274_s23, %s34_s17  }
  0x28   : > { %p43_p7 = por %p42_p0, %p41_p12  ;;  %s1426_s26 = sshll.u32 %s263_s11, 6 }
  0x29   : > { %s904_s29 = sshll.u32 %s1278_s24, 6  ;;  %s1673_s0 = sld [smem:[#allocation20_spill]] }
  0x2a   : > { %s267_s10 = scalar_lea.vmem [#allocation2], %s1426_s26  ;;  %p1433_p2 = pnand %p968_p5, %p43_p7 }
  0x2b   : > { %s275_s12 = sshll.u32 %s267_s10, 4  ;;  %s294_s16 = scalar_lea.hbm %s1649_s1, %s904_s29  ;;  %s276_s12 = int_to_ptr.vmem [resolvable:$true] %s275_s12 }
  0x2c   : > { %s295_s2 = sshll.u32 %s294_s16, 4  ;;  %s264_s3 = scalar_lea.sflag [#allocation3], %s263_s11  ;;  %s296_s2 = int_to_ptr.hbm [resolvable:$true] %s295_s2 }
  0x2d   : > { %p1140_p10 = pneg %p1433_p2 }
  0x2f   : > { %s272_s9 = scalar_lea.hbm %s1673_s0, %s904_s29  ;;  %s1143_s10 = scalar_lea.hbm %s1673_s0, 128 }
  0x30   : > { %s273_s13 = sshll.u32 %s272_s9, 4  ;;  %s274_s13 = int_to_ptr.hbm [resolvable:$true] %s273_s13 }
  0x31   : > { %s1136_s4 = sshra.s32 %s274_s13, 4  ;;  %s1137_s4 = int_to_ptr.hbm [resolvable:$true] %s1136_s4 }
  0x32   : > { %s1138_s30 = scalar_lea.hbm %s1137_s4, 64  ;;  %p1144_p0 = scmp.lt.s32.totalorder %s1137_s4, %s1673_s0 }
  0x33   : > { %p1139_p9 = scmp.ne.s32.totalorder %s1137_s4, %s1138_s30  ;;  %p1145_p5 = scmp.lt.s32.totalorder %s1143_s10, %s1138_s30 }
  0x35   : > { %p1141_p12 = pnand %p1140_p10, %p1139_p9  ;;  %p1146_p7 = por %p1145_p5, %p1144_p0 }
  0x37   : > { %p1142_p13 = pneg %p1141_p12 }
  0x39   : > { %p1147_p11 = pnand %p1146_p7, %p1142_p13 }
  0x3b   : > { %1150 = shalt.err (!%p1147_p11)
}
  0x3c   : > { %s1675_s16 = smov 8   ;;  %s1676_s11 = smov 128  }
  0x3d   : > { %956 = dma.hbm_to_vmem [thread:$0]  (!%p1433_p2), %s274_s13, 1024, %s276_s12, %s264_s3, %s1676_s11, %s1676_s11, %s1675_s16  }
  0x3e   : > { %s289_s29 = scalar_lea.vmem [#allocation5], %s1426_s26  ;;  %s285_s9 = sand.u32 1, %s1278_s24  }
  0x3f   : > { %s297_s7 = sshll.u32 %s289_s29, 4  ;;  %s286_s15 = scalar_lea.sflag [#allocation6], %s285_s9  ;;  %s298_s7 = int_to_ptr.vmem [resolvable:$true] %s297_s7 }
  0x40   : > { %s1166_s4 = sshra.s32 %s296_s2, 4  ;;  %s1173_s0 = scalar_lea.hbm %s1649_s1, 128  ;;  %s1167_s4 = int_to_ptr.hbm [resolvable:$true] %s1166_s4 }
  0x41   : > { %s1168_s30 = scalar_lea.hbm %s1167_s4, 64  ;;  %p1174_p13 = scmp.lt.s32.totalorder %s1167_s4, %s1649_s1 }
  0x42   : > { %p1169_p9 = scmp.ne.s32.totalorder %s1167_s4, %s1168_s30  ;;  %p1175_p0 = scmp.lt.s32.totalorder %s1173_s0, %s1168_s30 }
  0x44   : > { %p1171_p11 = pnand %p1169_p9, %p1140_p10  ;;  %p1176_p5 = por %p1175_p0, %p1174_p13 }
  0x46   : > { %p1172_p12 = pneg %p1171_p11 }
  0x48   : > { %p1177_p7 = pnand %p1176_p5, %p1172_p12 }
  0x4a   : > { %1180 = shalt.err (!%p1177_p7)
}
  0x4b   : > { %959 = dma.hbm_to_vmem [thread:$0]  (!%p1433_p2), %s296_s2, 1024, %s298_s7, %s286_s15, %s1676_s11, %s1676_s11, %s1675_s16  }
  0x4c   : > { %309 = sbr.rel (%p1364_p8) target bundleno = 592 (0x250), region = 44  ;;  %s1475_s26 = sand.u32 (!%p1364_p8), 1, %s1270_s22  }
  0x4d   : > { %s888_s5 = sshll.u32 (!%p1364_p8), %s1475_s26, 6  ;;  %s312_s0 = scalar_lea.sflag (!%p1364_p8), [#allocation3], %s1475_s26 }
  0x4e   : > { %s315_s12 = scalar_lea.vmem (!%p1364_p8), [#allocation2], %s888_s5 }
  0x51   : > { %1241 = dma.done.wait (%p1351_p4), %s312_s0, 1024  }
  0x52   : > { %1243 = vsyncadd (%p1351_p4), %s312_s0, 4294966272  ;;  %s321_s2 = sand.u32 1, %s1342_s25   ;;  %s1484_s8 = scalar_lea.vmem [#allocation5], %s888_s5 }
  0x53   : > { %s322_s13 = scalar_lea.sflag [#allocation6], %s321_s2 }
  0x54   : > { %1245 = dma.done.wait (%p1351_p4), %s322_s13, 1024  }
  0x55   : > { %1247 = vsyncadd (%p1351_p4), %s322_s13, 4294966272 }
  0x56   : > { %1249 = dma.done.wait (%p48_p1), [#allocation6], 256  }
  0x57   : > { %1251 = vsyncadd (%p48_p1), [#allocation6], 4294967040 }
  0x58   : > { %1253 = dma.done.wait (%p48_p1), [#allocation9], 512  }
  0x59   : > { %1255 = vsyncadd (%p48_p1), [#allocation9], 4294966784 }
  0x5a   : > { %1257 = dma.done.wait (%p48_p1), [#allocation12], 256  }
  0x5b   : > { %1259 = vsyncadd (%p48_p1), [#allocation12], 4294967040  ;;  %vm403_vm0 = vcmask 130048   ;;  %v380_v0 = vld [vmem:[%s315_s12 + $0x8] sm:$0xff]  ;;  %v1502_v1 = vld [vmem:[%s315_s12 + $0x18] sm:$0xff]  ;;  %s743_s4 = scalar_lea.hbm %s1654_s6, %s1342_s25  ;;  %s378_s30 = scalar_lea.vmem [#allocation13], %s1475_s26 }
  0x5c   : > { %v1504_v2 = vld [vmem:[%s315_s12 + $0x28] sm:$0xff]  ;;  %v1506_v3 = vld [vmem:[%s315_s12 + $0x38] sm:$0xff]  ;;  %v507_v4 = vsel %vm403_vm0, %v380_v0, 0.0  ;;  %v508_v5 = vsel %vm403_vm0, %v1502_v1, 0.0  ;;  %v379_v9 = vld [vmem:[%s315_s12] sm:$0xff]  ;;  %s1615_s10 = sshll.u32 %s378_s30, 4  ;;  %s746_s10 = int_to_ptr.vmem [resolvable:$true] %s1615_s10 }
  0x5d   : > { %v510_v6 = vsel %vm403_vm0, %v1504_v2, 0.0  ;;  %v509_v7 = vadd.f32 %v508_v5, %v507_v4  ;;  %v512_v8 = vsel %vm403_vm0, %v1506_v3, 0.0  ;;  %v381_v11 = vld [vmem:[%s315_s12 + $0x10] sm:$0xff]  ;;  %v1515_v12 = vld [vmem:[%s315_s12 + $0x20] sm:$0xff]  ;;  %v500_v13 = vsel %vm403_vm0, %v379_v9, 0.0  ;;  %v614_v17 = vld [vmem:[#allocation11 + $0x8] sm:$0xff] }
  0x5e   : > { %v1518_v15 = vld [vmem:[%s315_s12 + $0x30] sm:$0xff]  ;;  %v501_v16 = vsel %vm403_vm0, %v381_v11, 0.0  ;;  %v503_v19 = vsel %vm403_vm0, %v1515_v12, 0.0  ;;  %635 = vmatpush.msra.mxu3 %v614_v17  ;;  %v520_v24 = vld [vmem:[#allocation7] sm:$0xff]  ;;  %v583_v25 = vld [vmem:[#allocation8 + $0x8] sm:$0xff]  ;;  %s747_s17 = sshll.u32 %s743_s4, 4  ;;  %s748_s17 = int_to_ptr.hbm [resolvable:$true] %s747_s17 }
  0x5f   : > { %v511_v10 = vadd.f32 %v510_v6, %v509_v7  ;;  %v502_v18 = vadd.f32 %v501_v16, %v500_v13  ;;  %v505_v20 = vsel %vm403_vm0, %v1518_v15, 0.0  ;;  %v582_v23 = vld [vmem:[#allocation8] sm:$0xff]  ;;  %v521_v26 = vld [vmem:[#allocation7 + $0x8] sm:$0xff]  ;;  %v551_v29 = vld [vmem:[#allocation10] sm:$0xff]  ;;  %vm732_vm11 = vcmask 57344   ;;  %s735_s25 = scalar_lea.sflag [#allocation4], %s1475_s26 }
  0x60   : > { %v613_v27 = vld [vmem:[#allocation11] sm:$0xff]  ;;  %v552_v28 = vld [vmem:[#allocation10 + $0x8] sm:$0xff]  ;;  %v387_v35 = vld [vmem:[%s1484_s8] sm:$0xff]  ;;  %s1210_s3 = sshra.s32 %s748_s17, 4  ;;  %s1216_s2 = scalar_lea.hbm %s1654_s6, 2  ;;  %s1211_s3 = int_to_ptr.hbm [resolvable:$true] %s1210_s3 }
  0x61   : > { %v513_v14 = vadd.f32 %v512_v8, %v511_v10  ;;  %v504_v21 = vadd.f32 %v503_v19, %v502_v18  ;;  %636 = vmatpush.msra.mxu3 %v613_v27  ;;  %573 = vmatpush.msra.mxu1 %v552_v28  ;;  %v388_v34 = vld [vmem:[%s1484_s8 + $0x8] sm:$0xff]  ;;  %v389_v37 = vld [vmem:[%s1484_s8 + $0x10] sm:$0xff]  ;;  %v395_v38 = vmul.f32 0.7, %v387_v35  ;;  %v390_v39 = vld [vmem:[%s1484_s8 + $0x18] sm:$0xff]  ;;  %s1212_s5 = scalar_lea.hbm %s1211_s3, 1  ;;  %p1217_p2 = scmp.lt.s32.totalorder %s1211_s3, %s1654_s6 }
  0x62   : > { %v396_v36 = vmul.f32 0.7, %v388_v34  ;;  %v397_v41 = vmul.f32 0.7, %v389_v37  ;;  %v391_v43 = vld [vmem:[%s1484_s8 + $0x20] sm:$0xff]  ;;  %v392_v47 = vld [vmem:[%s1484_s8 + $0x28] sm:$0xff]  ;;  %p1213_p1 = scmp.ne.s32.totalorder %s1211_s3, %s1212_s5  ;;  %p1218_p10 = scmp.lt.s32.totalorder %s1216_s2, %s1212_s5 }
  0x63   : > { %604 = vmatpush.msra.mxu2 %v513_v14  ;;  %542 = vmatpush.msra.mxu0 %v513_v14  ;;  %v506_v22 = vadd.f32 %v505_v20, %v504_v21  ;;  %v460_v42 = vsub.f32 %v379_v9, %v395_v38  ;;  %v398_v44 = vmul.f32 0.7, %v390_v39  ;;  %v1539_v45 = vsel %vm403_vm0, %v395_v38, 0.0  ;;  %v393_v50 = vld [vmem:[%s1484_s8 + $0x30] sm:$0xff]  ;;  %v394_v13 = vld [vmem:[%s1484_s8 + $0x38] sm:$0xff] }
  0x64   : > { %574 = vmatpush.msra.mxu1 %v551_v29  ;;  %v461_v40 = vsub.f32 %v380_v0, %v396_v36  ;;  %v1542_v46 = vsel %vm403_vm0, %v396_v36, 0.0  ;;  %v399_v51 = vmul.f32 0.7, %v391_v43  ;;  %v1549_v53 = vsel %vm403_vm0, %v397_v41, 0.0  ;;  %p1214_p4 = pnand %p1213_p1, %p1417_p3  ;;  %p1219_p9 = por %p1218_p10, %p1217_p2 }
  0x65   : > { %605 = vmatpush.msra.mxu2 %v506_v22  ;;  %543 = vmatpush.msra.mxu0 %v506_v22  ;;  %v406_v49 = vadd.f32 %v1542_v46, %v1539_v45  ;;  %v468_v52 = vmul.f32 %v460_v42, %v460_v42  ;;  %v463_v54 = vsub.f32 %v1502_v1, %v398_v44  ;;  %v400_v57 = vmul.f32 0.7, %v392_v47 }
  0x66   : > { %898 = vmatmul.msk.f32.vlgmr.msra.gmra.mxu2 %vm403_vm0, %v582_v23  ;;  %894 = vmatmul.msk.f32.vlgmr.msra.gmra.mxu0 %vm403_vm0, %v520_v24  ;;  %v469_v48 = vmul.f32 %v461_v40, %v461_v40  ;;  %v462_v55 = vsub.f32 %v381_v11, %v397_v41  ;;  %v1554_v58 = vsel %vm403_vm0, %v398_v44, 0.0  ;;  %v401_v60 = vmul.f32 0.7, %v393_v50  ;;  %p1215_p8 = pneg %p1214_p4 }
  0x67   : > { %v408_v56 = vadd.f32 %v1549_v53, %v406_v49  ;;  %v476_v62 = vsel %vm403_vm0, %v468_v52, 0.0  ;;  %v1560_v63 = vsel %vm403_vm0, %v399_v51, 0.0  ;;  %v428_v0 = vmul.f32 %v395_v38, %v395_v38 }
  0x68   : > { %v477_v59 = vsel %vm403_vm0, %v469_v48, 0.0  ;;  %v429_v1 = vmul.f32 %v396_v36, %v396_v36  ;;  %v471_v4 = vmul.f32 %v463_v54, %v463_v54  ;;  %v470_v5 = vmul.f32 %v462_v55, %v462_v55  ;;  %p1220_p11 = pnand %p1219_p9, %p1215_p8 }
  0x69   : > { %v410_v61 = vadd.f32 %v1554_v58, %v408_v56  ;;  %v1564_v7 = vsel %vm403_vm0, %v400_v57, 0.0  ;;  %v430_v8 = vmul.f32 %v397_v41, %v397_v41  ;;  %v436_v9 = vsel %vm403_vm0, %v428_v0, 0.0 }
  0x6a   : > { %v437_v10 = vsel %vm403_vm0, %v429_v1, 0.0  ;;  %v464_v11 = vsub.f32 %v1515_v12, %v399_v51  ;;  %v478_v17 = vadd.f32 %v477_v59, %v476_v62  ;;  %v402_v18 = vmul.f32 0.7, %v394_v13 }
  0x6b   : > { %v412_v6 = vadd.f32 %v1560_v63, %v410_v61  ;;  %v438_v16 = vadd.f32 %v437_v10, %v436_v9  ;;  %v1572_v19 = vsel %vm403_vm0, %v401_v60, 0.0  ;;  %v431_v20 = vmul.f32 %v398_v44, %v398_v44 }
  0x6c   : > { %v439_v21 = vsel %vm403_vm0, %v430_v8, 0.0  ;;  %v465_v22 = vsub.f32 %v1504_v2, %v400_v57  ;;  %v1579_v12 = vsel %vm403_vm0, %v402_v18, 0.0  ;;  %v466_v29 = vsub.f32 %v1518_v15, %v401_v60 }
  0x6d   : > { %v414_v14 = vadd.f32 %v1564_v7, %v412_v6  ;;  %v440_v24 = vadd.f32 %v439_v21, %v438_v16  ;;  %v441_v27 = vsel %vm403_vm0, %v431_v20, 0.0  ;;  %v434_v2 = vmul.f32 %v401_v60, %v401_v60 }
  0x6e   : > { %899 = vmatmul.msk.f32.gmra.mxu2 %vm403_vm0, %v583_v25  ;;  %895 = vmatmul.msk.f32.gmra.mxu0 %vm403_vm0, %v521_v26  ;;  %v479_v25 = vsel %vm403_vm0, %v470_v5, 0.0  ;;  %v432_v26 = vmul.f32 %v399_v51, %v399_v51  ;;  %v481_v34 = vsel %vm403_vm0, %v471_v4, 0.0  ;;  %v435_v35 = vmul.f32 %v402_v18, %v402_v18 }
  0x6f   : > { %v416_v23 = vadd.f32 %v1572_v19, %v414_v14  ;;  %v480_v28 = vadd.f32 %v479_v25, %v478_v17  ;;  %v467_v37 = vsub.f32 %v1506_v3, %v402_v18  ;;  %v473_v38 = vmul.f32 %v465_v22, %v465_v22 }
  0x70   : > { %v443_v36 = vsel %vm403_vm0, %v432_v26, 0.0  ;;  %v447_v15 = vsel %vm403_vm0, %v434_v2, 0.0  ;;  %v474_v41 = vmul.f32 %v466_v29, %v466_v29  ;;  %v449_v44 = vsel %vm403_vm0, %v435_v35, 0.0 }
  0x71   : > { %v482_v43 = vadd.f32 %v481_v34, %v480_v28  ;;  %v475_v47 = vmul.f32 %v467_v37, %v467_v37  ;;  %v485_v49 = vsel %vm403_vm0, %v473_v38, 0.0  ;;  %v514_v21 = vadd.f32 %v1549_v53, %v1539_v45 }
  0x72   : > { %v487_v3 = vsel %vm403_vm0, %v474_v41, 0.0 }
  0x73   : > { %v489_v55 = vsel %vm403_vm0, %v475_v47, 0.0 }
  0xe3   : > { %v545_v30 = vpop.f32.mrf.mxu0 }
  0xe4   : > { %896 = vmatmul.msk.f32.vlgmr.msra.gmra.mxu1 %vm403_vm0, %v545_v30  ;;  %v418_v30 = vadd.f32 %v1579_v12, %v416_v23 }
  0xe6   : > { %419 = vadd.xlane.f32.xlu0 %v418_v30 }
  0xe9   : > { %v607_v31 = vpop.f32.mrf.mxu2 }
  0xea   : > { %900 = vmatmul.msk.f32.vlgmr.msra.gmra.mxu3 %vm403_vm0, %v607_v31  ;;  %v442_v31 = vadd.f32 %v441_v27, %v440_v24  ;;  %v517_v24 = vadd.f32 %v1554_v58, %v1542_v46  ;;  %v515_v27 = vadd.f32 %v514_v21, %v1560_v63 }
  0xeb   : > { %v548_v32 = vpop.f32.mrf.mxu0 }
  0xec   : > { %897 = vmatmul.msk.f32.gmra.mxu1 %vm403_vm0, %v548_v32  ;;  %v472_v32 = vmul.f32 %v464_v11, %v464_v11  ;;  %v444_v39 = vadd.f32 %v443_v36, %v442_v31  ;;  %v518_v29 = vadd.f32 %v517_v24, %v1564_v7 }
  0xee   : > { %v483_v48 = vsel %vm403_vm0, %v472_v32, 0.0  ;;  %v519_v2 = vadd.f32 %v518_v29, %v1579_v12 }
  0xef   : > { %v484_v51 = vadd.f32 %v483_v48, %v482_v43 }
  0xf1   : > { %v610_v33 = vpop.f32.mrf.mxu2  ;;  %v486_v54 = vadd.f32 %v485_v49, %v484_v51 }
  0xf2   : > { %901 = vmatmul.msk.f32.gmra.mxu3 %vm403_vm0, %v610_v33  ;;  %v433_v33 = vmul.f32 %v400_v57, %v400_v57 }
  0xf3   : > { %v488_v57 = vadd.f32 %v487_v3, %v486_v54 }
  0xf4   : > { %v445_v40 = vsel %vm403_vm0, %v433_v33, 0.0  ;;  %v516_v33 = vadd.f32 %v515_v27, %v1572_v19  ;;  %v712_v27 = vlaneseq }
  0xf5   : > { %v446_v42 = vadd.f32 %v445_v40, %v444_v39  ;;  %v490_v59 = vadd.f32 %v489_v55, %v488_v57 }
  0xf7   : > { %v448_v50 = vadd.f32 %v447_v15, %v446_v42  ;;  %491 = vadd.xlane.f32.xlu1 %v490_v59 }
  0xf9   : > { %v450_v52 = vadd.f32 %v449_v44, %v448_v50 }
  0xfb   : > { %451 = vadd.xlane.f32.xlu0 %v450_v52 }
 0x159   : > { %v420_v12 = vpop.xlane.xlu0 %419 }
 0x15a   : > { %v421_v15 = vrot.slane %v420_v12, 4 }
 0x15c   : > { %v422_v41 = vadd.f32 %v421_v15, %v420_v12 }
 0x15e   : > { %v423_v44 = vrot.slane %v422_v41, 2 }
 0x160   : > { %v424_v52 = vadd.f32 %v423_v44, %v422_v41 }
 0x161   : > { %v576_v56 = vpop.f32.mrf.mxu1 }
 0x162   : > { %v644_v60 = vmul.f32 %v576_v56, %v576_v56  ;;  %v425_v55 = vrot.slane %v424_v52, 1 }
 0x164   : > { %v426_v57 = vadd.f32 %v425_v55, %v424_v52 }
 0x166   : > { %906 = vpush %v426_v57 }
 0x169   : > { %v579_v1 = vpop.f32.mrf.mxu1 }
 0x16a   : > { %v645_v4 = vmul.f32 %v579_v1, %v579_v1  ;;  %v492_v48 = vpop.xlane.xlu1 %491 }
 0x16b   : > { %v493_v50 = vrot.slane %v492_v48, 4 }
 0x16d   : > { %v638_v61 = vpop.f32.mrf.mxu3  ;;  %v494_v3 = vadd.f32 %v493_v50, %v492_v48 }
 0x16e   : > { %v646_v62 = vmul.f32 %v638_v61, %v638_v61  ;;  %v452_v42 = vpop.xlane.xlu0 %451 }
 0x16f   : > { %v453_v43 = vrot.slane %v452_v42, 4  ;;  %v495_v54 = vrot.slane %v494_v3, 2 }
 0x170   : > { %v648_v0 = vadd.f32 %v646_v62, %v644_v60 }
 0x171   : > { %v454_v47 = vadd.f32 %v453_v43, %v452_v42  ;;  %v496_v60 = vadd.f32 %v495_v54, %v494_v3 }
 0x172   : > { %1012 = vrsqrt.f32 %v648_v0  ;;  %v686_v11 = vsel %vm403_vm0, %v648_v0, 0.0  ;;  %vm657_vm1 = vcmp.eq.f32.partialorder %v648_v0, inf  ;;  %v660_v32 = vand.u32 2147483648, %v648_v0 }
 0x173   : > { %vm659_vm2 = vcmp.eq.f32.partialorder %v648_v0, 0.0  ;;  %v455_v49 = vrot.slane %v454_v47, 2  ;;  %v497_v61 = vrot.slane %v496_v60, 1 }
 0x175   : > { %v641_v5 = vpop.f32.mrf.mxu3  ;;  %v456_v51 = vadd.f32 %v455_v49, %v454_v47  ;;  %v498_v62 = vadd.f32 %v497_v61, %v496_v60 }
 0x176   : > { %v647_v6 = vmul.f32 %v641_v5, %v641_v5 }
 0x177   : > { %v457_v56 = vrot.slane %v456_v51, 1 }
 0x178   : > { %v1013_v8 = vpop.eup %1012  ;;  %v649_v9 = vadd.f32 %v647_v6, %v645_v4 }
 0x179   : > { %v651_v10 = vmul.f32 %v1013_v8, %v648_v0  ;;  %v458_v59 = vadd.f32 %v457_v56, %v456_v51 }
 0x17a   : > { %v687_v13 = vsel %vm403_vm0, %v649_v9, 0.0  ;;  %1014 = vrsqrt.f32 %v649_v9  ;;  %vm669_vm3 = vcmp.eq.f32.partialorder %v649_v9, inf  ;;  %v672_v46 = vand.u32 2147483648, %v649_v9 }
 0x17b   : > { %v688_v14 = vadd.f32 %v687_v13, %v686_v11  ;;  %v652_v16 = vmul.f32 %v1013_v8, %v651_v10  ;;  %vm671_vm4 = vcmp.eq.f32.partialorder %v649_v9, 0.0  ;;  %908 = vpush %v458_v59 }
 0x17c   : > { %910 = vpush %v498_v62 }
 0x17d   : > { %689 = vadd.xlane.f32.xlu2 %v688_v14  ;;  %v653_v17 = vmul.f32 0.5, %v652_v16 }
 0x17f   : > { %v654_v18 = vsub.f32 1.5, %v653_v17 }
 0x180   : > { %v1015_v20 = vpop.eup %1014 }
 0x181   : > { %v655_v22 = vmul.f32 %v1013_v8, %v654_v18  ;;  %v663_v23 = vmul.f32 %v1015_v20, %v649_v9 }
 0x183   : > { %v656_v25 = vmul.f32 %v655_v22, %v648_v0  ;;  %v664_v26 = vmul.f32 %v1015_v20, %v663_v23 }
 0x185   : > { %v665_v28 = vmul.f32 0.5, %v664_v26  ;;  %v658_v30 = vsel %vm657_vm1, %v648_v0, %v656_v25 }
 0x186   : > { %v661_v53 = vsel %vm659_vm2, %v660_v32, %v658_v30 }
 0x187   : > { %v666_v31 = vsub.f32 1.5, %v665_v28  ;;  %v698_v63 = vmul.f32 %v661_v53, %v516_v33  ;;  %v674_v36 = vsel %vm403_vm0, %v661_v53, 0.0  ;;  %v713_v28 = vand.u32 127, %v712_v27 }
 0x189   : > { %v667_v45 = vmul.f32 %v1015_v20, %v666_v31  ;;  %v700_v19 = vsel %vm403_vm0, %v698_v63, 0.0  ;;  %vm719_vm5 = vcmp.eq.s32.totalorder %v713_v28, 5  ;;  %vm718_vm6 = vcmp.eq.s32.totalorder %v713_v28, 4 }
 0x18a   : > { %vm717_vm7 = vcmp.eq.s32.totalorder %v713_v28, 3  ;;  %vm716_vm8 = vcmp.eq.s32.totalorder %v713_v28, 2  ;;  %vm715_vm9 = vcmp.eq.s32.totalorder %v713_v28, 1  ;;  %vm714_vm10 = vcmp.eq.s32.totalorder %v713_v28, 0 }
 0x18b   : > { %v668_v34 = vmul.f32 %v667_v45, %v649_v9 }
 0x18d   : > { %v670_v58 = vsel %vm669_vm3, %v649_v9, %v668_v34 }
 0x18e   : > { %v673_v35 = vsel %vm671_vm4, %v672_v46, %v670_v58 }
 0x18f   : > { %v675_v7 = vsel %vm403_vm0, %v673_v35, 0.0  ;;  %v699_v37 = vmul.f32 %v673_v35, %v519_v2 }
 0x190   : > { %v676_v38 = vadd.f32 %v675_v7, %v674_v36 }
 0x191   : > { %v701_v39 = vsel %vm403_vm0, %v699_v37, 0.0 }
 0x192   : > { %677 = vadd.xlane.f32.xlu1 %v676_v38  ;;  %v702_v40 = vadd.f32 %v701_v39, %v700_v19 }
 0x194   : > { %703 = vadd.xlane.f32.xlu2 %v702_v40 }
 0x197   : > { %s1608_s27 = spop %906 }
 0x198   : > { %v730_v46 = vstv %s1608_s27 }
 0x1ac   : > { %s909_s18 = spop %908 }
 0x1ad   : > { %s911_s16 = spop %910  ;;  %v728_v2 = vstv %s909_s18 }
 0x1ae   : > { %v726_v45 = vstv %s911_s16 }
 0x1f0   : > { %v690_v0 = vpop.xlane.xlu2 %689 }
 0x1f1   : > { %v691_v1 = vrot.slane %v690_v0, 4 }
 0x1f3   : > { %v692_v4 = vadd.f32 %v691_v1, %v690_v0 }
 0x1f5   : > { %v693_v5 = vrot.slane %v692_v4, 2 }
 0x1f7   : > { %v694_v13 = vadd.f32 %v693_v5, %v692_v4 }
 0x1f9   : > { %v695_v20 = vrot.slane %v694_v13, 1 }
 0x1fb   : > { %v696_v25 = vadd.f32 %v695_v20, %v694_v13 }
 0x205   : > { %v678_v6 = vpop.xlane.xlu1 %677 }
 0x206   : > { %v679_v8 = vrot.slane %v678_v6, 4 }
 0x207   : > { %v704_v9 = vpop.xlane.xlu2 %703 }
 0x208   : > { %v680_v10 = vadd.f32 %v679_v8, %v678_v6  ;;  %v705_v11 = vrot.slane %v704_v9, 4 }
 0x20a   : > { %v681_v14 = vrot.slane %v680_v10, 2  ;;  %v706_v16 = vadd.f32 %v705_v11, %v704_v9 }
 0x20c   : > { %v682_v17 = vadd.f32 %v681_v14, %v680_v10  ;;  %v707_v18 = vrot.slane %v706_v16, 2 }
 0x20e   : > { %v708_v21 = vadd.f32 %v707_v18, %v706_v16  ;;  %v683_v22 = vrot.slane %v682_v17, 1 }
 0x210   : > { %v684_v23 = vadd.f32 %v683_v22, %v682_v17  ;;  %v709_v24 = vrot.slane %v708_v21, 1 }
 0x212   : > { %912 = vpush %v684_v23  ;;  %v710_v26 = vadd.f32 %v709_v24, %v708_v21 }
 0x213   : > { %914 = vpush %v696_v25 }
 0x214   : > { %916 = vpush %v710_v26 }
 0x243   : > { %s913_s11 = spop %912 }
 0x244   : > { %s915_s29 = spop %914  ;;  %v724_v32 = vstv %s913_s11 }
 0x245   : > { %s917_s7 = spop %916  ;;  %v722_v30 = vstv %s915_s29 }
 0x246   : > { %v720_v29 = vstv %s917_s7 }
 0x247   : > { %v721_v31 = vsel %vm719_vm5, %v720_v29, 0.0 }
 0x248   : > { %v723_v33 = vsel %vm718_vm6, %v722_v30, %v721_v31 }
 0x249   : > { %v725_v53 = vsel %vm717_vm7, %v724_v32, %v723_v33 }
 0x24a   : > { %v727_v34 = vsel %vm716_vm8, %v726_v45, %v725_v53 }
 0x24b   : > { %v729_v58 = vsel %vm715_vm9, %v728_v2, %v727_v34 }
 0x24c   : > { %v731_v63 = vsel %vm714_vm10, %v730_v46, %v729_v58 }
 0x24d   : > { %733 = vst.msk [vmem:[%s378_s30] sm:$0x1] %vm732_vm11, %v731_v63 }
 0x24e   : > { %1223 = shalt.err (!%p1220_p11)
}
 0x24f   : > { %938 = dma.vmem_to_hbm [thread:$0]  (%p1417_p3), %s746_s10, 16, %s748_s17, %s735_s25  }
 0x250 PF: > { %s759_s26 = sand.u32 1, %s1266_s21   ;;  %p1677_p12 = scmp.ge.s32.totalorder %s1278_s24, 2 }
 0x251   : > { %s760_s27 = scalar_lea.sflag [#allocation4], %s759_s26 }
 0x252   : > { %p961_p13 = pnand %p1677_p12, %p1356_p6 }
 0x254   : > { %p962_p0 = pneg %p961_p13 }
 0x256   : > { %1261 = dma.done.wait (%p962_p0), %s760_s27, 16  }
 0x257   : > { %1263 = vsyncadd (%p962_p0), %s760_s27, 4294967280  ;;  %p24_p5 = scmp.ge.s32.totalorder %s1407_s14, 4   ;;  %s1678_s21 = smov %s1270_s22 }
 0x258   : > { %s1679_s22 = smov %s1274_s23  ;;  %s1680_s23 = smov %s1423_s20 }
 0x259   : > { %s1681_s24 = smov %s1407_s14  ;;  %26 = sbr.rel (!%p24_p5) target bundleno = 15 (0xf), region = 118 }
 0x25e   :  { %765 = vsyncpa [#allocation3], 1 }
 0x25f   :  { %767 = vsyncpa [#allocation3 + $0x1], 1 }
 0x260   :  { %768 = vsyncpa [#allocation6], 1 }
 0x261   :  { %770 = vsyncpa [#allocation6 + $0x1], 1 }
 0x262   :  { %771 = vsyncpa [#allocation9], 1 }
 0x263   :  { %772 = vsyncpa [#allocation12], 1 }
 0x264   :  { %773 = vsyncpa [#allocation4], 1 }
 0x265   :  { %775 = vsyncpa [#allocation4 + $0x1], 1 }

</bundles_post_ra>
